<compile_context>
chip_gen: v7x
topology: tpu7x:2x2x1
jax: 0.10.0
libtpu: 0.0.40
codegen_flags: <defaults>
</compile_context>

<pallas_src>
import functools

import jax
import jax.numpy as jnp
import numpy as np
from jax.experimental import pallas as pl
from jax.experimental.pallas import tpu as pltpu


def _round_up(x, m):
    return ((x + m - 1) // m) * m


def _vmem_capacity_bytes():
    """VMEM capacity of the attached TPU (64 MiB on v7x, 128 MiB on v5e/v6e)."""
    try:
        info = pltpu.get_tpu_info()
        cap = getattr(info, "vmem_capacity_bytes", None)
        if cap:
            return int(cap)
    except Exception:
        pass
    return 64 * 1024 * 1024  # conservative (v7x) fallback


def _choose_tile(n_tot, n_rows_pad, d_pad, vmem_cap):
    """Pick the pair-tile size TT from the VMEM budget (bytes, not rows)."""
    budget = vmem_cap // 4  # leave headroom for double-buffering + temporaries
    # Per pair-row f32 working set: selection row (n_rows_pad lanes), gathered
    # diff row (d_pad lanes), lane-padded idx block (128 lanes); x2 slack for
    # pipeline copies / compiler temporaries.
    per_row_bytes = 4 * (n_rows_pad + d_pad + 128) * 2
    tt = budget // per_row_bytes
    tt = max(128, min(8192, (tt // 128) * 128))       # multiple of 128 lanes
    tt = min(tt, _round_up(n_tot, 128))               # don't exceed the problem
    num_tiles = pl.cdiv(n_tot, tt)
    # v7x megacore: the "parallel" grid axis is split across 2 TensorCores;
    # keep >= 2 tiles when there is enough work for both.
    if num_tiles == 1 and n_tot > 128:
        tt = max(128, _round_up(pl.cdiv(n_tot, 2), 128))
        num_tiles = pl.cdiv(n_tot, tt)
    return tt, num_tiles


# ----------------------------------------------------------------------------
# Pallas kernel: one tile of TT pairs -> one partial loss sum.
# ----------------------------------------------------------------------------
def _contrastive_kernel(cnt_ref,          # SMEM (2,) int32: [num_positive, num_total]
                        idx_ref,          # VMEM (TT, 2) int32 pair indices
                        emb_ref,          # VMEM (N_pad, D_pad) f32, resident
                        out_ref,          # VMEM (1, 8, 128) f32 partial sum
                        *, margin):
    tt = idx_ref.shape[0]
    n_rows = emb_ref.shape[0]
    i = pl.program_id(0)

    n_pos = cnt_ref[0]
    n_tot = cnt_ref[1]

    # Global pair index of each row in this tile (positives come first).
    row = jax.lax.broadcasted_iota(jnp.int32, (tt, 1), 0) + i * tt
    valid = row < n_tot            # mask padded tail rows (else they add margin^2)
    is_neg = row >= n_pos

    # Fused gather on the MXU: S[t, n] = [n == i0_t] - [n == i1_t]  (in {-1,0,1})
    # so  S @ E == E[i0] - E[i1]  without gathered rows ever touching HBM.
    col = jax.lax.broadcasted_iota(jnp.int32, (tt, n_rows), 1)
    i0 = idx_ref[:, 0:1]                               # (TT, 1)
    i1 = idx_ref[:, 1:2]                               # (TT, 1)
    sel = (jnp.where(col == i0, 1.0, 0.0)
           - jnp.where(col == i1, 1.0, 0.0)).astype(jnp.float32)
    d = jnp.dot(sel, emb_ref[...],
                preferred_element_type=jnp.float32)    # (TT, D_pad)

    sq = jnp.sum(d * d, axis=1, keepdims=True)         # (TT, 1)

    # positive: ||e0 - e1||^2 ; negative: relu(margin - ||e0 - e1||)^2
    neg_loss = jnp.square(jnp.maximum(jnp.float32(margin) - jnp.sqrt(sq), 0.0))
    per = jnp.where(is_neg, neg_loss, sq)
    per = jnp.where(valid, per, 0.0)

    # Lane-dense partial-sum block (unmasked stores).  Partials are summed in
    # f32 by XLA afterwards; fine at these scales (review correctness note #2).
    out_ref[...] = jnp.broadcast_to(jnp.sum(per), out_ref.shape).astype(jnp.float32)


# ----------------------------------------------------------------------------
# Wrapper: pad indices (cheap), keep embeddings resident, tile over pairs.
# ----------------------------------------------------------------------------
def online_contrastive_loss(embeddings, positive_pairs, negative_pairs, margin=1.0):
    emb = jnp.asarray(embeddings, dtype=jnp.float32)
    pos = np.asarray(positive_pairs, dtype=np.int32).reshape(-1, 2)
    neg = np.asarray(negative_pairs, dtype=np.int32).reshape(-1, 2)

    n_pos, n_neg = int(pos.shape[0]), int(neg.shape[0])
    n_tot = n_pos + n_neg
    if n_tot == 0:                       # guard: mean over zero pairs
        return jnp.float32(0.0)

    n, d = int(emb.shape[0]), int(emb.shape[1])
    # Lane-dense padding: selection-matrix contraction dim and gathered-diff
    # rows both become multiples of 128 (zero rows/cols contribute nothing).
    n_rows_pad = _round_up(n, 128)
    d_pad = _round_up(d, 128)
    emb_p = jnp.pad(emb, ((0, n_rows_pad - n), (0, d_pad - d)))

    vmem_cap = _vmem_capacity_bytes()
    tt, num_tiles = _choose_tile(n_tot, n_rows_pad, d_pad, vmem_cap)
    t_pad = num_tiles * tt

    # Pad the (cheap) int32 index list, never gathered (T, D) data.
    idx_np = np.zeros((t_pad, 2), dtype=np.int32)
    idx_np[:n_pos] = pos
    idx_np[n_pos:n_tot] = neg
    idx = jnp.asarray(idx_np)            # (T_pad, 2), positives first

    counts = jnp.asarray([n_pos, n_tot], dtype=jnp.int32)
    kernel = functools.partial(_contrastive_kernel, margin=float(margin))

    # 48 MiB on v7x (64 MiB physical), 96 MiB on v5e/v6e (128 MiB physical).
    vmem_limit = int(min(max(vmem_cap * 3 // 4, 32 * 1024 * 1024),
                         100 * 1024 * 1024))

    partial_sums = pl.pallas_call(
        kernel,
        out_shape=jax.ShapeDtypeStruct((num_tiles, 8, 128), jnp.float32),
        grid_spec=pltpu.PrefetchScalarGridSpec(
            num_scalar_prefetch=1,
            grid=(num_tiles,),
            in_specs=[
                # pair indices: one (TT, 2) block per grid step (single DMA stream)
                pl.BlockSpec((tt, 2), lambda i, cnt: (i, 0)),
                # embeddings: full array, resident in VMEM for every step
                pl.BlockSpec((n_rows_pad, d_pad), lambda i, cnt: (0, 0)),
            ],
            out_specs=pl.BlockSpec((1, 8, 128), lambda i, cnt: (i, 0, 0)),
        ),
        compiler_params=pltpu.CompilerParams(
            dimension_semantics=("parallel",),
            vmem_limit_bytes=vmem_limit,
        ),
    )(counts, idx, emb_p)

    total = jnp.sum(partial_sums[:, 0, 0])
    return total / jnp.float32(n_tot)


# ----------------------------------------------------------------------------
# Deterministic all-pairs selector (host-side stand-in for pair_selector).
# ----------------------------------------------------------------------------
def simple_pair_selector(target_np):
    target_np = np.asarray(target_np)
    n = len(target_np)
    pos, neg = [], []
    for i in range(n):
        for j in range(i + 1, n):
            if target_np[i] == target_np[j]:
                pos.append((i, j))
            else:
                neg.append((i, j))
    return (np.asarray(pos, dtype=np.int32).reshape(-1, 2),
            np.asarray(neg, dtype=np.int32).reshape(-1, 2))


# ----------------------------------------------------------------------------
# Pure-JAX reference (mirrors the PyTorch forward exactly)
# ----------------------------------------------------------------------------
def reference_loss(embeddings, positive_pairs, negative_pairs, margin):
    pos_loss = jnp.sum(
        (embeddings[positive_pairs[:, 0]] - embeddings[positive_pairs[:, 1]]) ** 2,
        axis=1)
    neg_dist = jnp.sqrt(jnp.sum(
        (embeddings[negative_pairs[:, 0]] - embeddings[negative_pairs[:, 1]]) ** 2,
        axis=1))
    neg_loss = jnp.maximum(margin - neg_dist, 0.0) ** 2
    return jnp.concatenate([pos_loss, neg_loss], axis=0).mean()


if __name__ == "__main__":
    N, D = 16, 32          # batch, embedding dim
    margin = 1.0

    key = jax.random.PRNGKey(0)
    embeddings = jax.random.normal(key, (N, D), dtype=jnp.float32)
    target_np = np.array([0, 0, 0, 0, 1, 1, 1, 1,
                          2, 2, 2, 2, 3, 3, 3, 3], dtype=np.int32)

    pos_np, neg_np = simple_pair_selector(target_np)

    loss = online_contrastive_loss(embeddings, pos_np, neg_np, margin)
    loss = jax.block_until_ready(loss)

    ref = reference_loss(embeddings, jnp.asarray(pos_np), jnp.asarray(neg_np),
                         margin)
    ref = jax.block_until_ready(ref)

    # Tolerance allows for the MXU executing the f32 selection matmul as
    # decomposed bf16 passes on some generations/compiler defaults.
    np.testing.assert_allclose(np.asarray(loss), np.asarray(ref),
                               rtol=5e-3, atol=5e-3)
    print("KERNEL_OK")
</pallas_src>

<mosaic_0001>
module attributes {stable_mosaic.version = 11 : i64} {
  func.func @_contrastive_kernel(%arg0: i32, %arg1: memref<2xi32, #tpu.memory_space<smem>>, %arg2: memref<128x2xi32, #tpu.memory_space<vmem>>, %arg3: memref<128x128xf32, #tpu.memory_space<vmem>>, %arg4: memref<1x8x128xf32, #tpu.memory_space<vmem>>) attributes {dimension_semantics = [#tpu.dimension_semantics<parallel>], iteration_bounds = array<i64: 1>, scalar_prefetch = 1 : i64, scratch_operands = 0 : i64, tpu.core_type = #tpu.core_type<tc>, window_params = [{transform_indices = @transform_0, window_bounds = array<i64: 128, 2>}, {pipeline_mode = #tpu.pipeline_mode<synchronous>, transform_indices = @transform_1, window_bounds = array<i64: 128, 128>}, {transform_indices = @transform_2, window_bounds = array<i64: 1, 8, 128>}]} {
    %c0 = arith.constant 0 : index
    %0 = memref.load %arg1[%c0] : memref<2xi32, #tpu.memory_space<smem>>
    %c1 = arith.constant 1 : index
    %1 = memref.load %arg1[%c1] : memref<2xi32, #tpu.memory_space<smem>>
    %2 = tpu.iota {dimensions = array<i32: 0>} : vector<128x1xi32>
    %c128_i32 = arith.constant 128 : i32
    %3 = arith.muli %arg0, %c128_i32 : i32
    %4 = vector.broadcast %3 : i32 to vector<128x1xi32>
    %5 = arith.addi %2, %4 : vector<128x1xi32>
    %6 = vector.broadcast %1 : i32 to vector<128x1xi32>
    %7 = arith.cmpi slt, %5, %6 : vector<128x1xi32>
    %8 = vector.broadcast %0 : i32 to vector<128x1xi32>
    %9 = arith.cmpi sge, %5, %8 : vector<128x1xi32>
    %10 = tpu.iota {dimensions = array<i32: 1>} : vector<128x128xi32>
    %c0_0 = arith.constant 0 : index
    %c0_1 = arith.constant 0 : index
    %11 = vector.load %arg2[%c0_0, %c0_1] : memref<128x2xi32, #tpu.memory_space<vmem>>, vector<128x1xi32>
    %c0_2 = arith.constant 0 : index
    %c1_3 = arith.constant 1 : index
    %12 = vector.load %arg2[%c0_2, %c1_3] : memref<128x2xi32, #tpu.memory_space<vmem>>, vector<128x1xi32>
    %13 = vector.broadcast %11 : vector<128x1xi32> to vector<128x128xi32>
    %14 = arith.cmpi eq, %10, %13 : vector<128x128xi32>
    %cst = arith.constant 1.000000e+00 : f32
    %cst_4 = arith.constant 0.000000e+00 : f32
    %15 = vector.broadcast %cst : f32 to vector<128x128xf32>
    %16 = vector.broadcast %cst_4 : f32 to vector<128x128xf32>
    %17 = arith.select %14, %15, %16 : vector<128x128xi1>, vector<128x128xf32>
    %18 = vector.broadcast %12 : vector<128x1xi32> to vector<128x128xi32>
    %19 = arith.cmpi eq, %10, %18 : vector<128x128xi32>
    %cst_5 = arith.constant 1.000000e+00 : f32
    %cst_6 = arith.constant 0.000000e+00 : f32
    %20 = vector.broadcast %cst_5 : f32 to vector<128x128xf32>
    %21 = vector.broadcast %cst_6 : f32 to vector<128x128xf32>
    %22 = arith.select %19, %20, %21 : vector<128x128xi1>, vector<128x128xf32>
    %23 = arith.subf %17, %22 : vector<128x128xf32>
    %c0_7 = arith.constant 0 : index
    %c0_8 = arith.constant 0 : index
    %24 = vector.load %arg3[%c0_7, %c0_8] : memref<128x128xf32, #tpu.memory_space<vmem>>, vector<128x128xf32>
    %cst_9 = arith.constant dense<0.000000e+00> : vector<128x128xf32>
    %25 = tpu.matmul %23, %24, %cst_9 {dimension_numbers = #tpu.dot_dimension_numbers<[1], [0], [0], [1], [0, 0, 1, 1], [], []>} : vector<128x128xf32>, vector<128x128xf32>, vector<128x128xf32> -> vector<128x128xf32>
    %26 = arith.mulf %25, %25 : vector<128x128xf32>
    %cst_10 = arith.constant dense<0.000000e+00> : vector<128xf32>
    %27 = vector.multi_reduction <add>, %26, %cst_10 [1] : vector<128x128xf32> to vector<128xf32>
    %28 = vector.shape_cast %27 : vector<128xf32> to vector<128x1xf32>
    %29 = math.sqrt %28 : vector<128x1xf32>
    %cst_11 = arith.constant 1.000000e+00 : f32
    %30 = vector.broadcast %cst_11 : f32 to vector<128x1xf32>
    %31 = arith.subf %30, %29 : vector<128x1xf32>
    %cst_12 = arith.constant 0.000000e+00 : f32
    %32 = vector.broadcast %cst_12 : f32 to vector<128x1xf32>
    %33 = arith.maximumf %31, %32 : vector<128x1xf32>
    %34 = arith.mulf %33, %33 : vector<128x1xf32>
    %35 = arith.select %9, %34, %28 : vector<128x1xi1>, vector<128x1xf32>
    %cst_13 = arith.constant 0.000000e+00 : f32
    %36 = vector.broadcast %cst_13 : f32 to vector<128x1xf32>
    %37 = arith.select %7, %35, %36 : vector<128x1xi1>, vector<128x1xf32>
    %38 = vector.shape_cast %37 : vector<128x1xf32> to vector<1x128x1xf32>
    %cst_14 = arith.constant dense<0.000000e+00> : vector<1xf32>
    %39 = vector.multi_reduction <add>, %38, %cst_14 [1, 2] : vector<1x128x1xf32> to vector<1xf32>
    %40 = vector.shape_cast %39 : vector<1xf32> to vector<1x1x1xf32>
    %41 = vector.extract %40[0, 0, 0] : f32 from vector<1x1x1xf32>
    %42 = vector.broadcast %41 : f32 to vector<1x8x128xf32>
    %c0_15 = arith.constant 0 : index
    %c0_16 = arith.constant 0 : index
    %c0_17 = arith.constant 0 : index
    %43 = vector.load %arg4[%c0_15, %c0_16, %c0_17] : memref<1x8x128xf32, #tpu.memory_space<vmem>>, vector<1x8x128xf32>
    tpu.vector_store %arg4[%c0_15, %c0_16, %c0_17], %42 {strides = array<i32>} : memref<1x8x128xf32, #tpu.memory_space<vmem>>, vector<1x8x128xf32>,
    return
  }
  func.func @transform_0(%arg0: i32, %arg1: memref<2xi32, #tpu.memory_space<smem>>) -> (i32, i32) {
    %c0_i32 = arith.constant 0 : i32
    %c0_i32_0 = arith.constant 0 : i32
    return %arg0, %c0_i32 : i32, i32
  }
  func.func @transform_1(%arg0: i32, %arg1: memref<2xi32, #tpu.memory_space<smem>>) -> (i32, i32) {
    %c0_i32 = arith.constant 0 : i32
    %c0_i32_0 = arith.constant 0 : i32
    %c0_i32_1 = arith.constant 0 : i32
    return %c0_i32, %c0_i32_0 : i32, i32
  }
  func.func @transform_2(%arg0: i32, %arg1: memref<2xi32, #tpu.memory_space<smem>>) -> (i32, i32, i32) {
    %c0_i32 = arith.constant 0 : i32
    %c0_i32_0 = arith.constant 0 : i32
    %c0_i32_1 = arith.constant 0 : i32
    return %arg0, %c0_i32, %c0_i32_0 : i32, i32, i32
  }
}

</mosaic_0001>

<bundles_post_ra>
// kernel: tpu_custom_call.1
= control target key start
LH: loop header
LB: loop body
LE: loop exit
PB: predicated region body
PF: predicated region fallthrough
CT: control target
= control target key end

     0   :  { %s1509_s0 = inlined_call_operand.vmem [shape: s32[2], index: 0, kind: input, shape index: {}]   ;;  %s1510_s1 = inlined_call_operand.vmem [shape: s32[128,2], index: 1, kind: input, shape index: {}]   ;;  %s1511_s2 = inlined_call_operand.vmem [shape: f32[128,128], index: 2, kind: input, shape index: {}]   ;;  %s1512_s3 = inlined_call_operand.hbm [shape: f32[1,8,128], index: 3, kind: output, shape index: {}]  }
   0x1   :  { %s8_s14 = sshll.u32 %s1509_s0, 4  ;;  %s9_s14 = int_to_ptr.vmem [resolvable:$true] %s8_s14 }
   0x2   :  { %s923_s15 = scalar_lea.vmem %s9_s14, 16  ;;  %p928_p1 = scmp.lt.s32.totalorder %s9_s14, %s9_s14 }
   0x3   :  { %p924_p0 = scmp.ne.s32.totalorder %s9_s14, %s923_s15  ;;  %p929_p2 = scmp.lt.s32.totalorder %s923_s15, %s923_s15 }
   0x5   :  { %p930_p3 = por %p929_p2, %p928_p1 }
   0x7   :  { %p931_p4 = pnand %p930_p3, %p924_p0 }
   0x9   :  { %934 = shalt.err (!%p931_p4)  }
   0xa   :  { %s961_s16 = smov [#allocation3]  }
   0xb   :  { %11 = dma.vmem_to_smem %s9_s14, 16, %s961_s16, [#allocation2] }
   0xc   :  { %957 = dma.done.wait [#allocation2], 16 }
   0xd   :  { %958 = vsyncadd [#allocation2], 4294967280 }
   0xe   :  { %13 = sfence }
   0xf   :  { %v93_v0 = vld [vmem:[%s1510_s1 + $0x8] sm:$0xff]  ;;  %v92_v1 = vld [vmem:[%s1510_s1] sm:$0xff]  ;;  %v962_v2 = vmov 0   ;;  %v963_v5 = vmov 1   ;;  %v286_v7 = vld [vmem:[%s1511_s2 + $0x10] sm:$0xff] }
  0x10   :  { %888 = vset.pattern.permute.xlu1 %v962_v2  ;;  %886 = vset.pattern.permute.xlu0 %v962_v2  ;;  %v284_v3 = vld [vmem:[%s1511_s2] sm:$0xff]  ;;  %v285_v4 = vld [vmem:[%s1511_s2 + $0x8] sm:$0xff]  ;;  %v287_v8 = vld [vmem:[%s1511_s2 + $0x18] sm:$0xff] }
  0x11   :  { %112 = vperm.xlu1 %888, %v93_v0   ;;  %109 = vperm.xlu0 %886, %v92_v1   ;;  %v831_v6 = vpack.c.bf16 %v285_v4, %v284_v3  ;;  %v835_v9 = vpack.c.bf16 %v287_v8, %v286_v7  ;;  %v288_v10 = vld [vmem:[%s1511_s2 + $0x20] sm:$0xff]  ;;  %v289_v11 = vld [vmem:[%s1511_s2 + $0x28] sm:$0xff]  ;;  %v94_v12 = vld [vmem:[%s1510_s1 + $0x10] sm:$0xff] }
  0x12   :  { %v839_v13 = vpack.c.bf16 %v289_v11, %v288_v10 }
  0x13   :  { %832 = vmatprep.subr.bf16.mxu0 %v831_v6  ;;  %863 = vmatprep.subr.bf16.mxu1 %v831_v6 }
  0x14   :  { %834 = vmatpush3.bf16.msra.mxu0 %v831_v6  ;;  %871 = vmatpush3.bf16.msra.mxu1 %v831_v6 }
  0x15   :  { %889 = vset.pattern.permute.xlu1 %v963_v5  ;;  %887 = vset.pattern.permute.xlu0 %v963_v5 }
  0x16   :  { %192 = vperm.xlu1 %889, %v93_v0   ;;  %189 = vperm.xlu0 %887, %v92_v1  }
  0x17   :  { %836 = vmatprep.subr.bf16.mxu0 %v835_v9  ;;  %864 = vmatprep.subr.bf16.mxu1 %v835_v9 }
  0x18   :  { %14 = vsyncpa [#allocation5], 0  ;;  %v290_v14 = vld [vmem:[%s1511_s2 + $0x30] sm:$0xff]  ;;  %v291_v15 = vld [vmem:[%s1511_s2 + $0x38] sm:$0xff]  ;;  %838 = vmatpush3.bf16.msra.mxu0 %v835_v9  ;;  %872 = vmatpush3.bf16.msra.mxu1 %v835_v9  ;;  %v21_v42 = vlaneseq  ;;  %v964_v48 = vmov 0.0   ;;  %s19_s23 = sld [smem:[#allocation3]] }
  0x19   :  { %v95_v16 = vld [vmem:[%s1510_s1 + $0x18] sm:$0xff]  ;;  %840 = vmatprep.subr.bf16.mxu0 %v839_v13  ;;  %v843_v17 = vpack.c.bf16 %v291_v15, %v290_v14  ;;  %865 = vmatprep.subr.bf16.mxu1 %v839_v13  ;;  %v292_v18 = vld [vmem:[%s1511_s2 + $0x40] sm:$0xff]  ;;  %v293_v19 = vld [vmem:[%s1511_s2 + $0x48] sm:$0xff]  ;;  %s965_s24 = smov [#allocation4]  }
  0x1a   :  { %890 = vset.pattern.permute.xlu1 %v962_v2  ;;  %195 = vperm.xlu0 %887, %v94_v12   ;;  %v96_v20 = vld [vmem:[%s1510_s1 + $0x20] sm:$0xff]  ;;  %v847_v21 = vpack.c.bf16 %v293_v19, %v292_v18  ;;  %v294_v22 = vld [vmem:[%s1511_s2 + $0x50] sm:$0xff]  ;;  %v295_v23 = vld [vmem:[%s1511_s2 + $0x58] sm:$0xff]  ;;  %v1086_v44 = vand.u32 127, %v21_v42  ;;  %s734_s25 = sshll.u32 %s965_s24, 4  ;;  %s735_s25 = int_to_ptr.vmem [resolvable:$true] %s734_s25 }
  0x1b   :  { %115 = vperm.xlu1 %890, %v94_v12   ;;  %v97_v24 = vld [vmem:[%s1510_s1 + $0x28] sm:$0xff]  ;;  %v851_v25 = vpack.c.bf16 %v295_v23, %v294_v22  ;;  %v296_v26 = vld [vmem:[%s1511_s2 + $0x60] sm:$0xff]  ;;  %v98_v28 = vld [vmem:[%s1510_s1 + $0x30] sm:$0xff]  ;;  %s935_s27 = scalar_lea.vmem %s735_s25, 128  ;;  %p940_p6 = scmp.lt.s32.totalorder %s735_s25, %s735_s25 }
  0x1c   :  { %842 = vmatpush3.bf16.msra.mxu0 %v839_v13  ;;  %873 = vmatpush3.bf16.msra.mxu1 %v839_v13  ;;  %v297_v27 = vld [vmem:[%s1511_s2 + $0x68] sm:$0xff]  ;;  %v298_v30 = vld [vmem:[%s1511_s2 + $0x70] sm:$0xff]  ;;  %v299_v31 = vld [vmem:[%s1511_s2 + $0x78] sm:$0xff]  ;;  %p936_p5 = scmp.ne.s32.totalorder %s735_s25, %s935_s27  ;;  %p941_p7 = scmp.lt.s32.totalorder %s935_s27, %s935_s27 }
  0x1d   :  { %844 = vmatprep.subr.bf16.mxu0 %v843_v17  ;;  %866 = vmatprep.subr.bf16.mxu1 %v843_v17  ;;  %v855_v29 = vpack.c.bf16 %v297_v27, %v296_v26  ;;  %v99_v32 = vld [vmem:[%s1510_s1 + $0x38] sm:$0xff]  ;;  %v859_v33 = vpack.c.bf16 %v299_v31, %v298_v30  ;;  %v100_v34 = vld [vmem:[%s1510_s1 + $0x40] sm:$0xff]  ;;  %v101_v35 = vld [vmem:[%s1510_s1 + $0x48] sm:$0xff] }
  0x1e   :  { %198 = vperm.xlu0 %887, %v95_v16   ;;  %v102_v36 = vld [vmem:[%s1510_s1 + $0x50] sm:$0xff]  ;;  %v103_v37 = vld [vmem:[%s1510_s1 + $0x58] sm:$0xff]  ;;  %v104_v38 = vld [vmem:[%s1510_s1 + $0x60] sm:$0xff]  ;;  %p942_p8 = por %p941_p7, %p940_p6 }
  0x1f   :  { %118 = vperm.xlu1 %890, %v95_v16   ;;  %v105_v39 = vld [vmem:[%s1510_s1 + $0x68] sm:$0xff]  ;;  %v106_v40 = vld [vmem:[%s1510_s1 + $0x70] sm:$0xff]  ;;  %v107_v41 = vld [vmem:[%s1510_s1 + $0x78] sm:$0xff]  ;;  %s742_s1 = sld [smem:[#allocation3 + $0x1]] }
  0x20   :  { %846 = vmatpush3.bf16.msra.mxu0 %v843_v17  ;;  %874 = vmatpush3.bf16.msra.mxu1 %v843_v17  ;;  %p943_p9 = pnand %p942_p8, %p936_p5 }
  0x21   :  { %848 = vmatprep.subr.bf16.mxu0 %v847_v21  ;;  %867 = vmatprep.subr.bf16.mxu1 %v847_v21 }
  0x22   :  { %201 = vperm.xlu0 %887, %v96_v20  }
  0x23   :  { %121 = vperm.xlu1 %890, %v96_v20  }
  0x24   :  { %850 = vmatpush3.bf16.msra.mxu0 %v847_v21  ;;  %875 = vmatpush3.bf16.msra.mxu1 %v847_v21 }
  0x25   :  { %852 = vmatprep.subr.bf16.mxu0 %v851_v25  ;;  %868 = vmatprep.subr.bf16.mxu1 %v851_v25 }
  0x26   :  { %204 = vperm.xlu0 %887, %v97_v24  }
  0x27   :  { %124 = vperm.xlu1 %890, %v97_v24  }
  0x28   :  { %854 = vmatpush3.bf16.msra.mxu0 %v851_v25  ;;  %876 = vmatpush3.bf16.msra.mxu1 %v851_v25 }
  0x29   :  { %856 = vmatprep.subr.bf16.mxu0 %v855_v29  ;;  %869 = vmatprep.subr.bf16.mxu1 %v855_v29 }
  0x2a   :  { %207 = vperm.xlu0 %887, %v98_v28  }
  0x2b   :  { %127 = vperm.xlu1 %890, %v98_v28  }
  0x2c   :  { %858 = vmatpush3.bf16.msra.mxu0 %v855_v29  ;;  %877 = vmatpush3.bf16.msra.mxu1 %v855_v29 }
  0x2d   :  { %860 = vmatprep.subr.bf16.mxu0 %v859_v33  ;;  %870 = vmatprep.subr.bf16.mxu1 %v859_v33 }
  0x2e   :  { %210 = vperm.xlu0 %887, %v99_v32  }
  0x2f   :  { %130 = vperm.xlu1 %890, %v99_v32  }
  0x30   :  { %862 = vmatpush3.bf16.msra.mxu0 %v859_v33  ;;  %878 = vmatpush3.bf16.msra.mxu1 %v859_v33 }
  0x32   :  { %213 = vperm.xlu0 %887, %v100_v34  }
  0x33   :  { %133 = vperm.xlu1 %890, %v100_v34  }
  0x36   :  { %216 = vperm.xlu0 %887, %v101_v35  }
  0x37   :  { %136 = vperm.xlu1 %890, %v101_v35  }
  0x3a   :  { %219 = vperm.xlu0 %887, %v102_v36  }
  0x3b   :  { %139 = vperm.xlu1 %890, %v102_v36  }
  0x3e   :  { %222 = vperm.xlu0 %887, %v103_v37  }
  0x3f   :  { %142 = vperm.xlu1 %890, %v103_v37  }
  0x42   :  { %225 = vperm.xlu0 %887, %v104_v38  }
  0x43   :  { %145 = vperm.xlu1 %890, %v104_v38  }
  0x46   :  { %228 = vperm.xlu0 %887, %v105_v39  }
  0x47   :  { %148 = vperm.xlu1 %890, %v105_v39  }
  0x4a   :  { %231 = vperm.xlu0 %887, %v106_v40  }
  0x4b   :  { %151 = vperm.xlu1 %890, %v106_v40  }
  0x4e   :  { %234 = vperm.xlu0 %887, %v107_v41  }
  0x4f   :  { %154 = vperm.xlu1 %890, %v107_v41  }
  0x90   :  { %v113_v43 = vpop.permute.xlu1 %112  ;;  %v110_v45 = vpop.permute.xlu0 %109 }
  0x91   :  { %vm157_vm0 = vcmp.eq.s32.totalorder %v1086_v44, %v113_v43  ;;  %vm156_vm1 = vcmp.eq.s32.totalorder %v1086_v44, %v110_v45 }
  0x92   :  { %v173_v49 = vsel %vm157_vm0, 1.0, %v964_v48  ;;  %v172_v51 = vsel %vm156_vm1, 1.0, %v964_v48 }
  0x95   :  { %v193_v46 = vpop.permute.xlu1 %192  ;;  %v190_v47 = vpop.permute.xlu0 %189 }
  0x96   :  { %vm237_vm2 = vcmp.eq.s32.totalorder %v1086_v44, %v193_v46  ;;  %vm236_vm3 = vcmp.eq.s32.totalorder %v1086_v44, %v190_v47 }
  0x97   :  { %v253_v50 = vsel %vm237_vm2, 1.0, %v964_v48  ;;  %v252_v52 = vsel %vm236_vm3, 1.0, %v964_v48 }
  0x98   :  { %v269_v53 = vsub.f32 %v173_v49, %v253_v50  ;;  %v268_v54 = vsub.f32 %v172_v51, %v252_v52 }
  0x99   :  { %v196_v55 = vpop.permute.xlu0 %195 }
  0x9a   :  { %vm238_vm4 = vcmp.eq.s32.totalorder %v1086_v44, %v196_v55  ;;  %v116_v56 = vpop.permute.xlu1 %115  ;;  %807 = vmatprep.mubr.f32.mxu0 %v268_v54 }
  0x9b   :  { %v254_v57 = vsel %vm238_vm4, 1.0, %v964_v48  ;;  %vm158_vm5 = vcmp.eq.s32.totalorder %v1086_v44, %v116_v56  ;;  %808 = vmatmul.mubr.f32.vlgmr.msra.gmra.mrb[0].mxu0 %v269_v53 }
  0x9c   :  { %v174_v58 = vsel %vm158_vm5, 1.0, %v964_v48 }
  0x9d   :  { %v270_v59 = vsub.f32 %v174_v58, %v254_v57  ;;  %v199_v60 = vpop.permute.xlu0 %198 }
  0x9e   :  { %vm239_vm6 = vcmp.eq.s32.totalorder %v1086_v44, %v199_v60  ;;  %v119_v61 = vpop.permute.xlu1 %118 }
  0x9f   :  { %v255_v62 = vsel %vm239_vm6, 1.0, %v964_v48  ;;  %vm159_vm7 = vcmp.eq.s32.totalorder %v1086_v44, %v119_v61  ;;  %810 = vmatprep.mubr.f32.mxu0 %v270_v59 }
  0xa0   :  { %v175_v63 = vsel %vm159_vm7, 1.0, %v964_v48 }
  0xa1   :  { %v271_v0 = vsub.f32 %v175_v63, %v255_v62  ;;  %v202_v1 = vpop.permute.xlu0 %201 }
  0xa2   :  { %vm240_vm8 = vcmp.eq.s32.totalorder %v1086_v44, %v202_v1  ;;  %v122_v2 = vpop.permute.xlu1 %121 }
  0xa3   :  { %v256_v3 = vsel %vm240_vm8, 1.0, %v964_v48  ;;  %vm160_vm9 = vcmp.eq.s32.totalorder %v1086_v44, %v122_v2  ;;  %811 = vmatmul.mubr.f32.gmra.mrb[2].mxu0 %v271_v0 }
  0xa4   :  { %v176_v4 = vsel %vm160_vm9, 1.0, %v964_v48 }
  0xa5   :  { %v272_v5 = vsub.f32 %v176_v4, %v256_v3  ;;  %v205_v6 = vpop.permute.xlu0 %204 }
  0xa6   :  { %vm241_vm10 = vcmp.eq.s32.totalorder %v1086_v44, %v205_v6  ;;  %v125_v7 = vpop.permute.xlu1 %124 }
  0xa7   :  { %v257_v8 = vsel %vm241_vm10, 1.0, %v964_v48  ;;  %vm161_vm11 = vcmp.eq.s32.totalorder %v1086_v44, %v125_v7  ;;  %813 = vmatprep.mubr.f32.mxu0 %v272_v5 }
  0xa8   :  { %v177_v9 = vsel %vm161_vm11, 1.0, %v964_v48 }
  0xa9   :  { %v273_v10 = vsub.f32 %v177_v9, %v257_v8  ;;  %v208_v11 = vpop.permute.xlu0 %207 }
  0xaa   :  { %vm242_vm12 = vcmp.eq.s32.totalorder %v1086_v44, %v208_v11  ;;  %v128_v12 = vpop.permute.xlu1 %127 }
  0xab   :  { %v258_v13 = vsel %vm242_vm12, 1.0, %v964_v48  ;;  %vm162_vm13 = vcmp.eq.s32.totalorder %v1086_v44, %v128_v12  ;;  %814 = vmatmul.mubr.f32.gmra.mrb[4].mxu0 %v273_v10 }
  0xac   :  { %v178_v14 = vsel %vm162_vm13, 1.0, %v964_v48 }
  0xad   :  { %v274_v15 = vsub.f32 %v178_v14, %v258_v13  ;;  %v211_v16 = vpop.permute.xlu0 %210 }
  0xae   :  { %vm243_vm14 = vcmp.eq.s32.totalorder %v1086_v44, %v211_v16  ;;  %v131_v17 = vpop.permute.xlu1 %130 }
  0xaf   :  { %v259_v18 = vsel %vm243_vm14, 1.0, %v964_v48  ;;  %vm163_vm15 = vcmp.eq.s32.totalorder %v1086_v44, %v131_v17  ;;  %816 = vmatprep.mubr.f32.mxu0 %v274_v15 }
  0xb0   :  { %v179_v19 = vsel %vm163_vm15, 1.0, %v964_v48 }
  0xb1   :  { %v275_v20 = vsub.f32 %v179_v19, %v259_v18  ;;  %v214_v21 = vpop.permute.xlu0 %213 }
  0xb2   :  { %vm244_vm0 = vcmp.eq.s32.totalorder %v1086_v44, %v214_v21  ;;  %v134_v22 = vpop.permute.xlu1 %133 }
  0xb3   :  { %vm164_vm1 = vcmp.eq.s32.totalorder %v1086_v44, %v134_v22  ;;  %817 = vmatmul.mubr.f32.gmra.mrb[6].mxu0 %v275_v20  ;;  %v260_v23 = vsel %vm244_vm0, 1.0, %v964_v48 }
  0xb4   :  { %v180_v24 = vsel %vm164_vm1, 1.0, %v964_v48 }
  0xb5   :  { %v217_v25 = vpop.permute.xlu0 %216  ;;  %v276_v26 = vsub.f32 %v180_v24, %v260_v23 }
  0xb6   :  { %vm245_vm2 = vcmp.eq.s32.totalorder %v1086_v44, %v217_v25  ;;  %v137_v27 = vpop.permute.xlu1 %136 }
  0xb7   :  { %v261_v28 = vsel %vm245_vm2, 1.0, %v964_v48  ;;  %vm165_vm3 = vcmp.eq.s32.totalorder %v1086_v44, %v137_v27  ;;  %819 = vmatprep.mubr.f32.mxu1 %v276_v26 }
  0xb8   :  { %v181_v29 = vsel %vm165_vm3, 1.0, %v964_v48 }
  0xb9   :  { %v277_v30 = vsub.f32 %v181_v29, %v261_v28  ;;  %v220_v31 = vpop.permute.xlu0 %219 }
  0xba   :  { %vm246_vm4 = vcmp.eq.s32.totalorder %v1086_v44, %v220_v31  ;;  %v140_v32 = vpop.permute.xlu1 %139 }
  0xbb   :  { %v262_v33 = vsel %vm246_vm4, 1.0, %v964_v48  ;;  %vm166_vm5 = vcmp.eq.s32.totalorder %v1086_v44, %v140_v32  ;;  %820 = vmatmul.mubr.f32.vlgmr.msra.gmra.mrb[0].mxu1 %v277_v30 }
  0xbc   :  { %v182_v34 = vsel %vm166_vm5, 1.0, %v964_v48 }
  0xbd   :  { %v278_v35 = vsub.f32 %v182_v34, %v262_v33  ;;  %v223_v36 = vpop.permute.xlu0 %222 }
  0xbe   :  { %vm247_vm6 = vcmp.eq.s32.totalorder %v1086_v44, %v223_v36  ;;  %v143_v37 = vpop.permute.xlu1 %142 }
  0xbf   :  { %v263_v38 = vsel %vm247_vm6, 1.0, %v964_v48  ;;  %vm167_vm7 = vcmp.eq.s32.totalorder %v1086_v44, %v143_v37  ;;  %822 = vmatprep.mubr.f32.mxu1 %v278_v35 }
  0xc0   :  { %v183_v39 = vsel %vm167_vm7, 1.0, %v964_v48 }
  0xc1   :  { %v279_v40 = vsub.f32 %v183_v39, %v263_v38  ;;  %v226_v41 = vpop.permute.xlu0 %225 }
  0xc2   :  { %vm248_vm8 = vcmp.eq.s32.totalorder %v1086_v44, %v226_v41  ;;  %v146_v43 = vpop.permute.xlu1 %145 }
  0xc3   :  { %v264_v45 = vsel %vm248_vm8, 1.0, %v964_v48  ;;  %vm168_vm9 = vcmp.eq.s32.totalorder %v1086_v44, %v146_v43  ;;  %823 = vmatmul.mubr.f32.gmra.mrb[2].mxu1 %v279_v40  ;;  %v1172_v40 = vshrl.u32 %v21_v42, 7 }
  0xc4   :  { %v184_v46 = vsel %vm168_vm9, 1.0, %v964_v48 }
  0xc5   :  { %v280_v47 = vsub.f32 %v184_v46, %v264_v45  ;;  %v229_v49 = vpop.permute.xlu0 %228  ;;  %v23_v42 = vadd.s32 8, %v1172_v40 }
  0xc6   :  { %vm249_vm10 = vcmp.eq.s32.totalorder %v1086_v44, %v229_v49  ;;  %v149_v50 = vpop.permute.xlu1 %148 }
  0xc7   :  { %v265_v51 = vsel %vm249_vm10, 1.0, %v964_v48  ;;  %vm169_vm11 = vcmp.eq.s32.totalorder %v1086_v44, %v149_v50  ;;  %825 = vmatprep.mubr.f32.mxu1 %v280_v47  ;;  %vm685_vm10 = vcmask 7168  }
  0xc8   :  { %v185_v52 = vsel %vm169_vm11, 1.0, %v964_v48 }
  0xc9   :  { %v281_v53 = vsub.f32 %v185_v52, %v265_v51  ;;  %v232_v54 = vpop.permute.xlu0 %231  ;;  %v1184_v52 = vstv %s742_s1 }
  0xca   :  { %vm250_vm12 = vcmp.eq.s32.totalorder %v1086_v44, %v232_v54  ;;  %v152_v55 = vpop.permute.xlu1 %151  ;;  %v1186_v54 = vstv %s19_s23  ;;  %vm58_vm8 = vcmp.lt.s32.totalorder %v23_v42, %v1184_v52  ;;  %vm57_vm11 = vcmp.lt.s32.totalorder %v1172_v40, %v1184_v52 }
  0xcb   :  { %v266_v56 = vsel %vm250_vm12, 1.0, %v964_v48  ;;  %vm170_vm13 = vcmp.eq.s32.totalorder %v1086_v44, %v152_v55  ;;  %826 = vmatmul.mubr.f32.gmra.mrb[4].mxu1 %v281_v53  ;;  %vm75_vm9 = vcmp.ge.s32.totalorder %v23_v42, %v1186_v54  ;;  %vm74_vm12 = vcmp.ge.s32.totalorder %v1172_v40, %v1186_v54 }
  0xcc   :  { %v186_v57 = vsel %vm170_vm13, 1.0, %v964_v48 }
  0xcd   :  { %v282_v58 = vsub.f32 %v186_v57, %v266_v56  ;;  %v235_v59 = vpop.permute.xlu0 %234  ;;  %v1189_v56 = vadd.s32 24, %v1172_v40 }
  0xce   :  { %vm251_vm14 = vcmp.eq.s32.totalorder %v1086_v44, %v235_v59  ;;  %v155_v60 = vpop.permute.xlu1 %154 }
  0xcf   :  { %v267_v61 = vsel %vm251_vm14, 1.0, %v964_v48  ;;  %vm171_vm15 = vcmp.eq.s32.totalorder %v1086_v44, %v155_v60  ;;  %828 = vmatprep.mubr.f32.mxu1 %v282_v58  ;;  %vm77_vm13 = vcmp.ge.s32.totalorder %v1189_v56, %v1186_v54 }
  0xd0   :  { %v187_v62 = vsel %vm171_vm15, 1.0, %v964_v48 }
  0xd1   :  { %v283_v63 = vsub.f32 %v187_v62, %v267_v61 }
  0xd3   :  { %829 = vmatmul.mubr.f32.gmra.mrb[6].mxu1 %v283_v63 }
 0x16e   :  { %v809_v0 = vpop.f32.mrb[0].mxu0 }
 0x16f   :  { %v446_v1 = vmul.f32 %v809_v0, %v809_v0  ;;  %v366_v2 = vpop.f32.mrb[1].mxu0 }
 0x170   :  { %v445_v3 = vmul.f32 %v366_v2, %v366_v2 }
 0x171   :  { %463 = vadd.xlane.f32.xlu0 %v446_v1 }
 0x172   :  { %461 = vadd.xlane.f32.xlu1 %v445_v3 }
 0x176   :  { %v812_v4 = vpop.f32.mrb[2].mxu0 }
 0x177   :  { %v448_v5 = vmul.f32 %v812_v4, %v812_v4  ;;  %v376_v6 = vpop.f32.mrb[3].mxu0 }
 0x178   :  { %v447_v7 = vmul.f32 %v376_v6, %v376_v6 }
 0x179   :  { %467 = vadd.xlane.f32.xlu1 %v448_v5 }
 0x17a   :  { %465 = vadd.xlane.f32.xlu0 %v447_v7 }
 0x17e   :  { %v815_v8 = vpop.f32.mrb[4].mxu0 }
 0x17f   :  { %v450_v9 = vmul.f32 %v815_v8, %v815_v8  ;;  %v386_v44 = vpop.f32.mrb[5].mxu0  ;;  %v24_v8 = vadd.s32 16, %v1172_v40 }
 0x180   :  { %v449_v10 = vmul.f32 %v386_v44, %v386_v44 }
 0x181   :  { %471 = vadd.xlane.f32.xlu1 %v450_v9 }
 0x182   :  { %469 = vadd.xlane.f32.xlu0 %v449_v10  ;;  %v1216_v10 = vadd.s32 40, %v1172_v40 }
 0x186   :  { %v818_v48 = vpop.f32.mrb[6].mxu0 }
 0x187   :  { %v452_v11 = vmul.f32 %v818_v48, %v818_v48  ;;  %v396_v12 = vpop.f32.mrb[7].mxu0  ;;  %v1219_v48 = vadd.s32 32, %v1172_v40 }
 0x188   :  { %v451_v13 = vmul.f32 %v396_v12, %v396_v12 }
 0x189   :  { %475 = vadd.xlane.f32.xlu1 %v452_v11 }
 0x18a   :  { %473 = vadd.xlane.f32.xlu0 %v451_v13 }
 0x18e   :  { %v821_v14 = vpop.f32.mrb[0].mxu1 }
 0x18f   :  { %v454_v15 = vmul.f32 %v821_v14, %v821_v14  ;;  %v406_v16 = vpop.f32.mrb[1].mxu1 }
 0x190   :  { %v453_v17 = vmul.f32 %v406_v16, %v406_v16 }
 0x191   :  { %479 = vadd.xlane.f32.xlu1 %v454_v15 }
 0x192   :  { %477 = vadd.xlane.f32.xlu0 %v453_v17 }
 0x196   :  { %v824_v18 = vpop.f32.mrb[2].mxu1 }
 0x197   :  { %v456_v19 = vmul.f32 %v824_v18, %v824_v18  ;;  %v416_v20 = vpop.f32.mrb[3].mxu1 }
 0x198   :  { %v455_v21 = vmul.f32 %v416_v20, %v416_v20 }
 0x199   :  { %483 = vadd.xlane.f32.xlu1 %v456_v19 }
 0x19a   :  { %481 = vadd.xlane.f32.xlu0 %v455_v21 }
 0x19e   :  { %v827_v22 = vpop.f32.mrb[4].mxu1 }
 0x19f   :  { %v458_v23 = vmul.f32 %v827_v22, %v827_v22  ;;  %v426_v24 = vpop.f32.mrb[5].mxu1 }
 0x1a0   :  { %v457_v25 = vmul.f32 %v426_v24, %v426_v24 }
 0x1a1   :  { %487 = vadd.xlane.f32.xlu1 %v458_v23 }
 0x1a2   :  { %485 = vadd.xlane.f32.xlu0 %v457_v25 }
 0x1a6   :  { %v830_v26 = vpop.f32.mrb[6].mxu1 }
 0x1a7   :  { %v460_v27 = vmul.f32 %v830_v26, %v830_v26  ;;  %v436_v28 = vpop.f32.mrb[7].mxu1 }
 0x1a8   :  { %v459_v29 = vmul.f32 %v436_v28, %v436_v28 }
 0x1a9   :  { %491 = vadd.xlane.f32.xlu1 %v460_v27 }
 0x1aa   :  { %489 = vadd.xlane.f32.xlu0 %v459_v29 }
 0x1fe   :  { %v1152_v30 = vpop.xlane.xlu0 %463 }
 0x1ff   :  { %891 = vrsqrt.f32 %v1152_v30  ;;  %v1155_v31 = vpop.xlane.xlu1 %461  ;;  %vm502_vm0 = vcmp.eq.f32.partialorder %v1152_v30, inf  ;;  %v505_v37 = vand.u32 2147483648, %v1152_v30  ;;  %vm504_vm1 = vcmp.eq.f32.partialorder %v1152_v30, 0.0 }
 0x200   :  { %893 = vrsqrt.f32 %v1155_v31  ;;  %vm495_vm2 = vcmp.eq.f32.partialorder %v1155_v31, inf  ;;  %v498_v45 = vand.u32 2147483648, %v1155_v31  ;;  %vm497_vm3 = vcmp.eq.f32.partialorder %v1155_v31, 0.0 }
 0x206   :  { %v1158_v32 = vpop.xlane.xlu1 %467 }
 0x207   :  { %895 = vrsqrt.f32 %v1158_v32  ;;  %v1161_v33 = vpop.xlane.xlu0 %465  ;;  %vm516_vm4 = vcmp.eq.f32.partialorder %v1158_v32, inf  ;;  %v519_v59 = vand.u32 2147483648, %v1158_v32  ;;  %vm518_vm5 = vcmp.eq.f32.partialorder %v1158_v32, 0.0 }
 0x208   :  { %897 = vrsqrt.f32 %v1161_v33  ;;  %vm509_vm6 = vcmp.eq.f32.partialorder %v1161_v33, inf  ;;  %v512_v62 = vand.u32 2147483648, %v1161_v33  ;;  %vm511_vm7 = vcmp.eq.f32.partialorder %v1161_v33, 0.0 }
 0x209   :  { %v892_v34 = vpop.eup %891 }
 0x20a   :  { %v894_v35 = vpop.eup %893  ;;  %v501_v36 = vmul.f32 %v892_v34, %v1152_v30 }
 0x20b   :  { %v494_v38 = vmul.f32 %v894_v35, %v1155_v31 }
 0x20c   :  { %v503_v39 = vsel %vm502_vm0, %v1152_v30, %v501_v36  ;;  %vm60_vm0 = vcmp.lt.s32.totalorder %v1189_v56, %v1184_v52 }
 0x20d   :  { %v506_v41 = vsel %vm504_vm1, %v505_v37, %v503_v39  ;;  %v496_v43 = vsel %vm495_vm2, %v1155_v31, %v494_v38  ;;  %vm76_vm2 = vcmp.ge.s32.totalorder %v24_v8, %v1186_v54 }
 0x20e   :  { %v1177_v46 = vpop.xlane.xlu1 %471  ;;  %v606_v47 = vsub.f32 1.0, %v506_v41  ;;  %v499_v49 = vsel %vm497_vm3, %v498_v45, %v496_v43 }
 0x20f   :  { %899 = vrsqrt.f32 %v1177_v46  ;;  %v1180_v50 = vpop.xlane.xlu0 %469  ;;  %v605_v55 = vsub.f32 1.0, %v499_v49  ;;  %vm530_vm14 = vcmp.eq.f32.partialorder %v1177_v46, inf  ;;  %vm532_vm15 = vcmp.eq.f32.partialorder %v1177_v46, 0.0 }
 0x210   :  { %901 = vrsqrt.f32 %v1180_v50  ;;  %v622_v58 = vmax.f32 %v606_v47, 0.0  ;;  %v533_v16 = vand.u32 2147483648, %v1177_v46  ;;  %vm523_vm1 = vcmp.eq.f32.partialorder %v1180_v50, inf }
 0x211   :  { %v896_v51 = vpop.eup %895  ;;  %v621_v1 = vmax.f32 %v605_v55, 0.0  ;;  %v526_v20 = vand.u32 2147483648, %v1180_v50  ;;  %vm525_vm3 = vcmp.eq.f32.partialorder %v1180_v50, 0.0 }
 0x212   :  { %v898_v53 = vpop.eup %897  ;;  %v515_v57 = vmul.f32 %v896_v51, %v1158_v32  ;;  %v638_v4 = vmul.f32 %v622_v58, %v622_v58 }
 0x213   :  { %v508_v60 = vmul.f32 %v898_v53, %v1161_v33  ;;  %v637_v12 = vmul.f32 %v621_v1, %v621_v1 }
 0x214   :  { %v517_v61 = vsel %vm516_vm4, %v1158_v32, %v515_v57  ;;  %v654_v14 = vsel %vm75_vm9, %v638_v4, %v1152_v30  ;;  %vm59_vm4 = vcmp.lt.s32.totalorder %v24_v8, %v1184_v52  ;;  %vm62_vm9 = vcmp.lt.s32.totalorder %v1216_v10, %v1184_v52 }
 0x215   :  { %v520_v63 = vsel %vm518_vm5, %v519_v59, %v517_v61  ;;  %v510_v0 = vsel %vm509_vm6, %v1161_v33, %v508_v60  ;;  %v670_v23 = vsel %vm58_vm8, %v654_v14, 0.0  ;;  %v653_v24 = vsel %vm74_vm12, %v637_v12, %v1155_v31 }
 0x216   :  { %v513_v2 = vsel %vm511_vm7, %v512_v62, %v510_v0  ;;  %v1203_v3 = vpop.xlane.xlu1 %475  ;;  %v608_v5 = vsub.f32 1.0, %v520_v63  ;;  %vm79_vm5 = vcmp.ge.s32.totalorder %v1216_v10, %v1186_v54  ;;  %vm61_vm6 = vcmp.lt.s32.totalorder %v1219_v48, %v1184_v52 }
 0x217   :  { %v607_v6 = vsub.f32 1.0, %v513_v2  ;;  %903 = vrsqrt.f32 %v1203_v3  ;;  %v1206_v7 = vpop.xlane.xlu0 %473  ;;  %vm78_vm7 = vcmp.ge.s32.totalorder %v1219_v48, %v1186_v54  ;;  %v1258_v31 = vadd.s32 48, %v1172_v40 }
 0x218   :  { %905 = vrsqrt.f32 %v1206_v7  ;;  %v624_v15 = vmax.f32 %v608_v5, 0.0  ;;  %v669_v36 = vsel %vm57_vm11, %v653_v24, 0.0  ;;  %v687_v38 = vsel %vm685_vm10, %v670_v23, 0.0 }
 0x219   :  { %v900_v9 = vpop.eup %899  ;;  %v623_v44 = vmax.f32 %v607_v6, 0.0  ;;  %vm544_vm8 = vcmp.eq.f32.partialorder %v1203_v3, inf  ;;  %v547_v41 = vand.u32 2147483648, %v1203_v3  ;;  %v686_v42 = vsel %vm685_vm10, %v669_v36, 0.0 }
 0x21a   :  { %v902_v11 = vpop.eup %901  ;;  %v529_v13 = vmul.f32 %v900_v9, %v1177_v46  ;;  %v640_v27 = vmul.f32 %v624_v15, %v624_v15  ;;  %vm546_vm11 = vcmp.eq.f32.partialorder %v1203_v3, 0.0  ;;  %vm80_vm12 = vcmp.ge.s32.totalorder %v1258_v31, %v1186_v54 }
 0x21b   :  { %v522_v17 = vmul.f32 %v902_v11, %v1180_v50  ;;  %v639_v18 = vmul.f32 %v623_v44, %v623_v44  ;;  %v540_v57 = vand.u32 2147483648, %v1206_v7  ;;  %v688_v2 = vadd.f32 %v687_v38, %v686_v42 }
 0x21c   :  { %v531_v19 = vsel %vm530_vm14, %v1177_v46, %v529_v13  ;;  %v656_v45 = vsel %vm77_vm13, %v640_v27, %v1158_v32  ;;  %vm537_vm13 = vcmp.eq.f32.partialorder %v1206_v7, inf  ;;  %vm539_vm14 = vcmp.eq.f32.partialorder %v1206_v7, 0.0 }
 0x21d   :  { %v534_v21 = vsel %vm532_vm15, %v533_v16, %v531_v19  ;;  %v524_v22 = vsel %vm523_vm1, %v1180_v50, %v522_v17  ;;  %v655_v34 = vsel %vm76_vm2, %v639_v18, %v1161_v33  ;;  %v1264_v33 = vadd.s32 56, %v1172_v40 }
 0x21e   :  { %v527_v25 = vsel %vm525_vm3, %v526_v20, %v524_v22  ;;  %v1245_v26 = vpop.xlane.xlu1 %479  ;;  %v610_v28 = vsub.f32 1.0, %v534_v21  ;;  %v671_v47 = vsel %vm59_vm4, %v655_v34, 0.0  ;;  %v672_v58 = vsel %vm60_vm0, %v656_v45, 0.0 }
 0x21f   :  { %v609_v29 = vsub.f32 1.0, %v527_v25  ;;  %907 = vrsqrt.f32 %v1245_v26  ;;  %v1248_v30 = vpop.xlane.xlu0 %477  ;;  %v689_v59 = vsel %vm685_vm10, %v671_v47, 0.0  ;;  %vm81_vm15 = vcmp.ge.s32.totalorder %v1264_v33, %v1186_v54 }
 0x220   :  { %909 = vrsqrt.f32 %v1248_v30  ;;  %v626_v49 = vmax.f32 %v610_v28, 0.0  ;;  %vm63_vm1 = vcmp.lt.s32.totalorder %v1258_v31, %v1184_v52  ;;  %v1307_v5 = vadd.s32 72, %v1172_v40 }
 0x221   :  { %v904_v35 = vpop.eup %903  ;;  %v625_v37 = vmax.f32 %v609_v29, 0.0  ;;  %v1310_v6 = vadd.s32 64, %v1172_v40  ;;  %v691_v9 = vsel %vm685_vm10, %v672_v58, 0.0  ;;  %vm558_vm0 = vcmp.eq.f32.partialorder %v1245_v26, inf }
 0x222   :  { %v543_v39 = vmul.f32 %v904_v35, %v1203_v3  ;;  %v906_v43 = vpop.eup %905  ;;  %v642_v63 = vmul.f32 %v626_v49, %v626_v49  ;;  %v690_v44 = vadd.f32 %v689_v59, %v688_v2  ;;  %vm64_vm2 = vcmp.lt.s32.totalorder %v1264_v33, %v1184_v52 }
 0x223   :  { %v641_v51 = vmul.f32 %v625_v37, %v625_v37  ;;  %v536_v55 = vmul.f32 %v906_v43, %v1206_v7  ;;  %vm560_vm3 = vcmp.eq.f32.partialorder %v1245_v26, 0.0  ;;  %v561_v16 = vand.u32 2147483648, %v1245_v26 }
 0x224   :  { %v545_v53 = vsel %vm544_vm8, %v1203_v3, %v543_v39  ;;  %v658_v15 = vsel %vm79_vm5, %v642_v63, %v1177_v46  ;;  %vm551_vm4 = vcmp.eq.f32.partialorder %v1248_v30, inf  ;;  %vm65_vm5 = vcmp.lt.s32.totalorder %v1310_v6, %v1184_v52 }
 0x225   :  { %v548_v32 = vsel %vm546_vm11, %v547_v41, %v545_v53  ;;  %v538_v61 = vsel %vm537_vm13, %v1206_v7, %v536_v55  ;;  %v657_v0 = vsel %vm78_vm7, %v641_v51, %v1180_v50  ;;  %v554_v46 = vand.u32 2147483648, %v1248_v30 }
 0x226   :  { %v612_v60 = vsub.f32 1.0, %v548_v32  ;;  %v1295_v62 = vpop.xlane.xlu1 %483  ;;  %v541_v56 = vsel %vm539_vm14, %v540_v57, %v538_v61  ;;  %v673_v11 = vsel %vm61_vm6, %v657_v0, 0.0  ;;  %vm553_vm6 = vcmp.eq.f32.partialorder %v1248_v30, 0.0 }
 0x227   :  { %911 = vrsqrt.f32 %v1295_v62  ;;  %v1304_v1 = vpop.xlane.xlu0 %481  ;;  %v611_v4 = vsub.f32 1.0, %v541_v56  ;;  %v693_v19 = vsel %vm685_vm10, %v673_v11, 0.0  ;;  %v674_v22 = vsel %vm62_vm9, %v658_v15, 0.0 }
 0x228   :  { %v628_v50 = vmax.f32 %v612_v60, 0.0  ;;  %913 = vrsqrt.f32 %v1304_v1  ;;  %v692_v23 = vadd.f32 %v691_v9, %v690_v44  ;;  %vm83_vm7 = vcmp.ge.s32.totalorder %v1307_v5, %v1186_v54 }
 0x229   :  { %v908_v8 = vpop.eup %907  ;;  %v627_v12 = vmax.f32 %v611_v4, 0.0  ;;  %v1351_v10 = vadd.s32 80, %v1172_v40  ;;  %vm82_vm8 = vcmp.ge.s32.totalorder %v1310_v6, %v1186_v54  ;;  %v1356_v37 = vadd.s32 88, %v1172_v40 }
 0x22a   :  { %v557_v13 = vmul.f32 %v908_v8, %v1245_v26  ;;  %v910_v14 = vpop.eup %909  ;;  %v644_v20 = vmul.f32 %v628_v50, %v628_v50  ;;  %v694_v35 = vadd.f32 %v693_v19, %v692_v23  ;;  %v695_v38 = vsel %vm685_vm10, %v674_v22, 0.0 }
 0x22b   :  { %v643_v48 = vmul.f32 %v627_v12, %v627_v12  ;;  %v550_v18 = vmul.f32 %v910_v14, %v1248_v30  ;;  %vm572_vm9 = vcmp.eq.f32.partialorder %v1295_v62, inf  ;;  %vm66_vm11 = vcmp.lt.s32.totalorder %v1307_v5, %v1184_v52 }
 0x22c   :  { %v559_v17 = vsel %vm558_vm0, %v1245_v26, %v557_v13  ;;  %v660_v39 = vsel %vm81_vm15, %v644_v20, %v1203_v3  ;;  %v575_v3 = vand.u32 2147483648, %v1295_v62  ;;  %vm565_vm13 = vcmp.eq.f32.partialorder %v1304_v1, inf }
 0x22d   :  { %v562_v21 = vsel %vm560_vm3, %v561_v16, %v559_v17  ;;  %v552_v25 = vsel %vm551_vm4, %v1248_v30, %v550_v18  ;;  %v659_v28 = vsel %vm80_vm12, %v643_v48, %v1206_v7  ;;  %vm574_vm12 = vcmp.eq.f32.partialorder %v1295_v62, 0.0 }
 0x22e   :  { %v614_v24 = vsub.f32 1.0, %v562_v21  ;;  %v1339_v27 = vpop.xlane.xlu1 %487  ;;  %v555_v29 = vsel %vm553_vm6, %v554_v46, %v552_v25  ;;  %v675_v41 = vsel %vm63_vm1, %v659_v28, 0.0  ;;  %vm567_vm14 = vcmp.eq.f32.partialorder %v1304_v1, 0.0 }
 0x22f   :  { %915 = vrsqrt.f32 %v1339_v27  ;;  %v1348_v34 = vpop.xlane.xlu0 %485  ;;  %v613_v36 = vsub.f32 1.0, %v555_v29  ;;  %vm84_vm15 = vcmp.ge.s32.totalorder %v1351_v10, %v1186_v54  ;;  %v696_v31 = vadd.f32 %v695_v38, %v694_v35 }
 0x230   :  { %917 = vrsqrt.f32 %v1348_v34  ;;  %v630_v43 = vmax.f32 %v614_v24, 0.0  ;;  %vm67_vm1 = vcmp.lt.s32.totalorder %v1351_v10, %v1184_v52  ;;  %v676_v55 = vsel %vm64_vm2, %v660_v39, 0.0 }
 0x231   :  { %v912_v7 = vpop.eup %911  ;;  %v629_v45 = vmax.f32 %v613_v36, 0.0  ;;  %v697_v32 = vsel %vm685_vm10, %v675_v41, 0.0  ;;  %v568_v58 = vand.u32 2147483648, %v1304_v1  ;;  %vm85_vm0 = vcmp.ge.s32.totalorder %v1356_v37, %v1186_v54 }
 0x232   :  { %v571_v47 = vmul.f32 %v912_v7, %v1295_v62  ;;  %v914_v49 = vpop.eup %913  ;;  %v646_v59 = vmul.f32 %v630_v43, %v630_v43  ;;  %v1401_v2 = vadd.s32 96, %v1172_v40  ;;  %v698_v4 = vadd.f32 %v697_v32, %v696_v31 }
 0x233   :  { %v645_v51 = vmul.f32 %v629_v45, %v629_v45  ;;  %v564_v53 = vmul.f32 %v914_v49, %v1304_v1  ;;  %v699_v44 = vsel %vm685_vm10, %v676_v55, 0.0  ;;  %vm586_vm2 = vcmp.eq.f32.partialorder %v1339_v27, inf }
 0x234   :  { %v573_v42 = vsel %vm572_vm9, %v1295_v62, %v571_v47  ;;  %v1413_v11 = vadd.s32 112, %v1172_v40  ;;  %vm68_vm3 = vcmp.lt.s32.totalorder %v1356_v37, %v1184_v52  ;;  %v662_v6 = vsel %vm83_vm7, %v646_v59, %v1245_v26 }
 0x235   :  { %v576_v57 = vsel %vm574_vm12, %v575_v3, %v573_v42  ;;  %v661_v60 = vsel %vm82_vm8, %v645_v51, %v1248_v30  ;;  %v566_v61 = vsel %vm565_vm13, %v1304_v1, %v564_v53  ;;  %v1404_v30 = vadd.s32 104, %v1172_v40 }
 0x236   :  { %v1391_v63 = vpop.xlane.xlu1 %491  ;;  %v616_v33 = vsub.f32 1.0, %v576_v57  ;;  %v569_v0 = vsel %vm567_vm14, %v568_v58, %v566_v61  ;;  %v677_v8 = vsel %vm65_vm5, %v661_v60, 0.0  ;;  %vm588_vm4 = vcmp.eq.f32.partialorder %v1339_v27, 0.0 }
 0x237   :  { %919 = vrsqrt.f32 %v1391_v63  ;;  %v1398_v56 = vpop.xlane.xlu0 %489  ;;  %v615_v9 = vsub.f32 1.0, %v569_v0  ;;  %v589_v16 = vand.u32 2147483648, %v1339_v27  ;;  %vm579_vm6 = vcmp.eq.f32.partialorder %v1348_v34, inf }
 0x238   :  { %921 = vrsqrt.f32 %v1398_v56  ;;  %v632_v12 = vmax.f32 %v616_v33, 0.0  ;;  %vm581_vm5 = vcmp.eq.f32.partialorder %v1348_v34, 0.0  ;;  %v701_v48 = vsel %vm685_vm10, %v677_v8, 0.0 }
 0x239   :  { %v916_v50 = vpop.eup %915  ;;  %v631_v13 = vmax.f32 %v615_v9, 0.0  ;;  %v700_v26 = vadd.f32 %v699_v44, %v698_v4  ;;  %v582_v20 = vand.u32 2147483648, %v1348_v34  ;;  %v678_v22 = vsel %vm66_vm11, %v662_v6, 0.0 }
 0x23a   :  { %v585_v14 = vmul.f32 %v916_v50, %v1339_v27  ;;  %v918_v15 = vpop.eup %917  ;;  %v648_v46 = vmul.f32 %v632_v12, %v632_v12  ;;  %vm69_vm7 = vcmp.lt.s32.totalorder %v1401_v2, %v1184_v52  ;;  %vm86_vm8 = vcmp.ge.s32.totalorder %v1401_v2, %v1186_v54 }
 0x23b   :  { %v578_v18 = vmul.f32 %v918_v15, %v1348_v34  ;;  %v647_v19 = vmul.f32 %v631_v13, %v631_v13  ;;  %v702_v28 = vadd.f32 %v701_v48, %v700_v26  ;;  %vm87_vm9 = vcmp.ge.s32.totalorder %v1404_v30, %v1186_v54 }
 0x23c   :  { %v587_v17 = vsel %vm586_vm2, %v1339_v27, %v585_v14  ;;  %vm600_vm11 = vcmp.eq.f32.partialorder %v1391_v63, inf  ;;  %vm602_vm12 = vcmp.eq.f32.partialorder %v1391_v63, 0.0  ;;  %v664_v38 = vsel %vm85_vm0, %v648_v46, %v1295_v62 }
 0x23d   :  { %v590_v21 = vsel %vm588_vm4, %v589_v16, %v587_v17  ;;  %v580_v23 = vsel %vm579_vm6, %v1348_v34, %v578_v18  ;;  %v663_v25 = vsel %vm84_vm15, %v647_v19, %v1304_v1  ;;  %v703_v1 = vsel %vm685_vm10, %v678_v22, 0.0 }
 0x23e   :  { %v618_v24 = vsub.f32 1.0, %v590_v21  ;;  %v583_v29 = vsel %vm581_vm5, %v582_v20, %v580_v23  ;;  %v679_v5 = vsel %vm67_vm1, %v663_v25, 0.0  ;;  %v603_v43 = vand.u32 2147483648, %v1391_v63 }
 0x23f   :  { %v617_v35 = vsub.f32 1.0, %v583_v29  ;;  %v705_v10 = vsel %vm685_vm10, %v679_v5, 0.0  ;;  %v704_v47 = vadd.f32 %v703_v1, %v702_v28  ;;  %vm593_vm13 = vcmp.eq.f32.partialorder %v1398_v56, inf }
 0x240   :  { %v634_v36 = vmax.f32 %v618_v24, 0.0  ;;  %v596_v3 = vand.u32 2147483648, %v1398_v56  ;;  %v680_v62 = vsel %vm68_vm3, %v664_v38, 0.0  ;;  %v37_v55 = vadd.s32 120, %v1172_v40 }
 0x241   :  { %v920_v7 = vpop.eup %919  ;;  %v633_v45 = vmax.f32 %v617_v35, 0.0  ;;  %v706_v53 = vadd.f32 %v705_v10, %v704_v47  ;;  %vm595_vm14 = vcmp.eq.f32.partialorder %v1398_v56, 0.0  ;;  %vm70_vm15 = vcmp.lt.s32.totalorder %v1404_v30, %v1184_v52 }
 0x242   :  { %v922_v39 = vpop.eup %921  ;;  %v599_v41 = vmul.f32 %v920_v7, %v1391_v63  ;;  %v650_v31 = vmul.f32 %v634_v36, %v634_v36  ;;  %v707_v33 = vsel %vm685_vm10, %v680_v62, 0.0  ;;  %vm89_vm1 = vcmp.ge.s32.totalorder %v37_v55, %v1186_v54 }
 0x243   :  { %v592_v49 = vmul.f32 %v922_v39, %v1398_v56  ;;  %v649_v42 = vmul.f32 %v633_v45, %v633_v45  ;;  %v708_v4 = vadd.f32 %v707_v33, %v706_v53  ;;  %vm88_vm0 = vcmp.ge.s32.totalorder %v1413_v11, %v1186_v54 }
 0x244   :  { %v601_v51 = vsel %vm600_vm11, %v1391_v63, %v599_v41  ;;  %v666_v40 = vsel %vm87_vm9, %v650_v31, %v1339_v27  ;;  %vm71_vm2 = vcmp.lt.s32.totalorder %v1413_v11, %v1184_v52  ;;  %vm72_vm3 = vcmp.lt.s32.totalorder %v37_v55, %v1184_v52 }
 0x245   :  { %v594_v32 = vsel %vm593_vm13, %v1398_v56, %v592_v49  ;;  %v604_v57 = vsel %vm602_vm12, %v603_v43, %v601_v51  ;;  %v665_v37 = vsel %vm86_vm8, %v649_v42, %v1348_v34  ;;  %v682_v50 = vsel %vm70_vm15, %v666_v40, 0.0 }
 0x246   :  { %v597_v58 = vsel %vm595_vm14, %v596_v3, %v594_v32  ;;  %v620_v59 = vsub.f32 1.0, %v604_v57  ;;  %v681_v61 = vsel %vm69_vm7, %v665_v37, 0.0  ;;  %v711_v12 = vsel %vm685_vm10, %v682_v50, 0.0 }
 0x247   :  { %v619_v60 = vsub.f32 1.0, %v597_v58  ;;  %v709_v8 = vsel %vm685_vm10, %v681_v61, 0.0 }
 0x248   :  { %v636_v0 = vmax.f32 %v620_v59, 0.0  ;;  %v710_v30 = vadd.f32 %v709_v8, %v708_v4 }
 0x249   :  { %v635_v9 = vmax.f32 %v619_v60, 0.0 }
 0x24a   :  { %v652_v34 = vmul.f32 %v636_v0, %v636_v0  ;;  %v712_v14 = vadd.f32 %v711_v12, %v710_v30 }
 0x24b   :  { %v651_v27 = vmul.f32 %v635_v9, %v635_v9 }
 0x24c   :  { %v668_v2 = vsel %vm89_vm1, %v652_v34, %v1391_v63 }
 0x24d   :  { %v667_v44 = vsel %vm88_vm0, %v651_v27, %v1398_v56  ;;  %v684_v13 = vsel %vm72_vm3, %v668_v2, 0.0 }
 0x24e   :  { %v683_v6 = vsel %vm71_vm2, %v667_v44, 0.0  ;;  %v715_v16 = vsel %vm685_vm10, %v684_v13, 0.0 }
 0x24f   :  { %v713_v54 = vsel %vm685_vm10, %v683_v6, 0.0 }
 0x250   :  { %v714_v15 = vadd.f32 %v713_v54, %v712_v14 }
 0x252   :  { %v716_v48 = vadd.f32 %v715_v16, %v714_v15 }
 0x254   :  { %717 = vadd.xlane.f32.xlu0 %v716_v48 }
 0x2e1   :  { %v718_v11 = vpop.xlane.xlu0 %717 }
 0x2e2   :  { %v719_v17 = vrot.slane %v718_v11, 4 }
 0x2e4   :  { %v720_v52 = vadd.f32 %v719_v17, %v718_v11 }
 0x2e6   :  { %v721_v18 = vrot.slane %v720_v52, 2 }
 0x2e8   :  { %v722_v19 = vadd.f32 %v721_v18, %v720_v52 }
 0x2ea   :  { %v723_v63 = vrot.slane %v722_v19, 1 }
 0x2ec   :  { %v724_v26 = vadd.f32 %v723_v63, %v722_v19 }
 0x2ee   :  { %879 = vpush %v724_v26 }
 0x31f   :  { %s880_s26 = spop %879 }
 0x320   :  { %v726_v56 = vstv %s880_s26 }
 0x321   :  { %727 = vst [vmem:[#allocation4] sm:$0xff] %v726_v56 }
 0x322   :  { %946 = shalt.err (!%p943_p9)
}
 0x323   :  { %s947_s30 = scalar_lea.hbm %s1512_s3, 128 }
 0x324   :  { %p948_p10 = scmp.ne.s32.totalorder %s1512_s3, %s947_s30  ;;  %p951_p11 = scmp.lt.u32.totalorder %s947_s30, %s1512_s3 }
 0x326   :  { %p953_p12 = pnand %p951_p11, %p948_p10 }
 0x328   :  { %956 = shalt.err (!%p953_p12)
}
 0x329   :  { %737 = dma.vmem_to_hbm [thread:$0]  %s735_s25, 128, %s1512_s3, [#allocation5]  }
 0x32a   :  { %959 = dma.done.wait [#allocation5], 128  }
 0x32b   :  { %960 = vsyncadd [#allocation5], 4294967168 }
 0x32c   :  { %741 = vsyncpa [#allocation5], 1 }

</bundles_post_ra>
